<compile_context>
chip_gen: v6e
topology: v6e:2x2x1
jax: 0.10.0
libtpu: 0.0.40
codegen_flags: <defaults>
</compile_context>

<pallas_src>
import functools

import jax
import jax.numpy as jnp
from jax import lax
from jax.experimental import pallas as pl
from jax.experimental.pallas import tpu as pltpu

_LANES = 128


def _nr_reciprocal(d):
    """EUP approximate reciprocal + one Newton-Raphson step (~f32 accurate)."""
    r = pl.reciprocal(d, approx=True)
    return r * (2.0 - d * r)


def _hybrid_kernel(b1_ref, b2_ref, l1_out_ref, giou_out_ref, l1_acc, giou_acc,
                   *, n_valid, block_rows, eps, lower, upper):
    i = pl.program_id(0)

    @pl.when(i == 0)
    def _init():
        l1_acc[...] = jnp.zeros_like(l1_acc)
        giou_acc[...] = jnp.zeros_like(giou_acc)

    # (block_rows, 128) tiles; lanes are interleaved x, y, w, h (natural layout).
    t1 = b1_ref[...]
    t2 = b2_ref[...]

    # ---------------- L1 on original xyhw boxes (every lane is one coord) ---
    l1_elem = jnp.abs(t1 - t2)

    # ---------------- lane de-interleave via XLU rotations -------------------
    # np.roll semantics: roll(x, 128 - k)[l] == x[(l + k) % 128].  At lanes
    # l % 4 == 0 the tuples (x1*, y1*, w*, h*) below are one real box; the
    # other lane phases hold garbage combinations that are discarded by the
    # lane-phase mask applied to the per-lane sums in the wrapper.
    y1a = pltpu.roll(t1, 127, axis=1)   # value from lane l+1
    wa = pltpu.roll(t1, 126, axis=1)    # value from lane l+2
    ha = pltpu.roll(t1, 125, axis=1)    # value from lane l+3
    y1b = pltpu.roll(t2, 127, axis=1)
    wb = pltpu.roll(t2, 126, axis=1)
    hb = pltpu.roll(t2, 125, axis=1)
    x1a, x1b = t1, t2

    # xyhw -> xyxy with minimum width/height eps.
    # max(x + w, x + eps) == x + max(w, eps) exactly in f32 (rounding is monotone).
    x2a = x1a + jnp.maximum(wa, eps)
    y2a = y1a + jnp.maximum(ha, eps)
    x2b = x1b + jnp.maximum(wb, eps)
    y2b = y1b + jnp.maximum(hb, eps)

    # torchvision generalized_box_iou_loss.
    xk1 = jnp.maximum(x1a, x1b)
    yk1 = jnp.maximum(y1a, y1b)
    xk2 = jnp.minimum(x2a, x2b)
    yk2 = jnp.minimum(y2a, y2b)
    inter = jnp.where((xk2 > xk1) & (yk2 > yk1), (xk2 - xk1) * (yk2 - yk1), 0.0)
    union = ((x2a - x1a) * (y2a - y1a)
             + (x2b - x1b) * (y2b - y1b) - inter)
    iou = inter * _nr_reciprocal(union + eps)

    xc1 = jnp.minimum(x1a, x1b)
    yc1 = jnp.minimum(y1a, y1b)
    xc2 = jnp.maximum(x2a, x2b)
    yc2 = jnp.maximum(y2a, y2b)
    area_c = (xc2 - xc1) * (yc2 - yc1)

    giou_elem = jnp.clip(
        1.0 - (iou - (area_c - union) * _nr_reciprocal(area_c + eps)),
        lower, upper)

    block_elems = block_rows * _LANES
    fully_valid = (i + 1) * block_elems <= n_valid

    @pl.when(fully_valid)
    def _fast():
        # Interior blocks: no masking at all (lane-phase handled in wrapper).
        l1_acc[...] += l1_elem
        giou_acc[...] += giou_elem

    @pl.when(jnp.logical_not(fully_valid))
    def _boundary():
        # Last block only: mask the zero pad / Pallas edge-block garbage rows.
        row = lax.broadcasted_iota(jnp.int32, (block_rows, _LANES), 0)
        lane = lax.broadcasted_iota(jnp.int32, (block_rows, _LANES), 1)
        idx = i * block_elems + row * _LANES + lane
        valid = idx < n_valid
        l1_acc[...] += jnp.where(valid, l1_elem, 0.0)
        giou_acc[...] += jnp.where(valid, giou_elem, 0.0)

    @pl.when(i == pl.num_programs(0) - 1)
    def _finish():
        # Single sublane reduce; the final 128-lane sums happen in the wrapper.
        l1_out_ref[...] = jnp.sum(l1_acc[...], axis=0, keepdims=True)
        giou_out_ref[...] = jnp.sum(giou_acc[...], axis=0, keepdims=True)


def hybrid_l1_giou(bboxes1, bboxes2, *, w_l1=5.0, w_giou=2.0, reduction="mean",
                   is_xyhw_format=True, giou_loss_lower_bound=-1.0,
                   giou_loss_upper_bound=10.0, eps=1e-9, block_rows=1024):
    assert bboxes1.shape == bboxes2.shape and bboxes1.shape[-1] == 4
    # TODO(synk): reduction='none' (per-box outputs) not wired through the kernel.
    assert reduction in ("mean", "sum")
    # TODO(synk): is_xyhw_format=False (already-xyxy boxes) path not implemented.
    assert is_xyhw_format

    M = 1
    for d in bboxes1.shape[:-1]:
        M *= int(d)
    n_valid = 4 * M

    # Natural contiguous layout: flatten to 1-D and view as (rows, 128).
    # Lane l of row r holds coordinate (l % 4) of box (r*32 + l//4).
    # TODO(synk): supplying boxes pre-flattened (element count a multiple of
    # 128) upstream also removes the conditional tail-pad copy below.
    rows_valid = pl.cdiv(n_valid, _LANES)
    rows_arr = max(rows_valid, 8)
    block_rows = max(8, (int(block_rows) // 8) * 8)
    if rows_arr <= block_rows:
        r_block, num_blocks = rows_arr, 1          # block == full dims is legal
    else:
        r_block = block_rows
        num_blocks = pl.cdiv(rows_arr, r_block)    # last block masked in-kernel

    def _as_planes(b):
        flat = jnp.reshape(jnp.asarray(b, jnp.float32), (-1,))
        pad = rows_arr * _LANES - n_valid
        if pad:
            flat = jnp.pad(flat, (0, pad))
        return flat.reshape(rows_arr, _LANES)

    b1 = _as_planes(bboxes1)
    b2 = _as_planes(bboxes2)

    kern = functools.partial(
        _hybrid_kernel, n_valid=n_valid, block_rows=r_block, eps=float(eps),
        lower=float(giou_loss_lower_bound), upper=float(giou_loss_upper_bound))

    elems = num_blocks * r_block * _LANES
    cost = pl.CostEstimate(
        flops=int(55 * elems),
        transcendentals=int(2 * elems),
        bytes_accessed=int(2 * rows_arr * _LANES * 4 + 2 * _LANES * 4))

    l1_parts, giou_parts = pl.pallas_call(
        kern,
        out_shape=(jax.ShapeDtypeStruct((1, _LANES), jnp.float32),
                   jax.ShapeDtypeStruct((1, _LANES), jnp.float32)),
        grid_spec=pltpu.PrefetchScalarGridSpec(
            num_scalar_prefetch=0,
            grid=(num_blocks,),
            in_specs=[pl.BlockSpec((r_block, _LANES), lambda i: (i, 0)),
                      pl.BlockSpec((r_block, _LANES), lambda i: (i, 0))],
            out_specs=[pl.BlockSpec((1, _LANES), lambda i: (0, 0)),
                       pl.BlockSpec((1, _LANES), lambda i: (0, 0))],
            scratch_shapes=[pltpu.VMEM((r_block, _LANES), jnp.float32),
                            pltpu.VMEM((r_block, _LANES), jnp.float32)],
        ),
        compiler_params=pltpu.CompilerParams(
            dimension_semantics=("arbitrary",)),
        cost_estimate=cost,
    )(b1, b2)

    # Final tiny reductions (and the deferred lane-phase mask for GIoU).
    lane = jnp.arange(_LANES)
    l1_sum = jnp.sum(l1_parts)
    giou_sum = jnp.sum(jnp.where(lane % 4 == 0, giou_parts[0], 0.0))
    if reduction == "mean":
        l1 = l1_sum / n_valid
        giou = giou_sum / M
    else:  # sum
        l1 = l1_sum
        giou = giou_sum
    return {"loss": w_l1 * l1 + w_giou * giou, "l1": l1, "giou": giou}


def _reference(bboxes1, bboxes2, *, w_l1=5.0, w_giou=2.0, eps=1e-9,
               lower=-1.0, upper=10.0):
    """Pure-JAX reference matching the PyTorch forward (reduction='mean')."""
    b1 = jnp.asarray(bboxes1, jnp.float32)
    b2 = jnp.asarray(bboxes2, jnp.float32)
    l1 = jnp.mean(jnp.abs(b1 - b2))

    x1a, y1a = b1[..., 0], b1[..., 1]
    x2a = jnp.maximum(x1a + b1[..., 2], x1a + eps)
    y2a = jnp.maximum(y1a + b1[..., 3], y1a + eps)
    x1b, y1b = b2[..., 0], b2[..., 1]
    x2b = jnp.maximum(x1b + b2[..., 2], x1b + eps)
    y2b = jnp.maximum(y1b + b2[..., 3], y1b + eps)

    xk1 = jnp.maximum(x1a, x1b); yk1 = jnp.maximum(y1a, y1b)
    xk2 = jnp.minimum(x2a, x2b); yk2 = jnp.minimum(y2a, y2b)
    inter = jnp.where((xk2 > xk1) & (yk2 > yk1), (xk2 - xk1) * (yk2 - yk1), 0.0)
    union = (x2a - x1a) * (y2a - y1a) + (x2b - x1b) * (y2b - y1b) - inter
    iou = inter / (union + eps)
    xc1 = jnp.minimum(x1a, x1b); yc1 = jnp.minimum(y1a, y1b)
    xc2 = jnp.maximum(x2a, x2b); yc2 = jnp.maximum(y2a, y2b)
    area_c = (xc2 - xc1) * (yc2 - yc1)
    loss = 1.0 - (iou - (area_c - union) / (area_c + eps))
    giou = jnp.mean(jnp.clip(loss, lower, upper))
    return {"loss": w_l1 * l1 + w_giou * giou, "l1": l1, "giou": giou}


def _check(out, ref):
    for name in ("loss", "l1", "giou"):
        assert jnp.allclose(out[name], ref[name], rtol=1e-5, atol=1e-5), (
            name, float(out[name]), float(ref[name]))


if __name__ == "__main__":
    key = jax.random.PRNGKey(0)
    k1, k2, k3, k4 = jax.random.split(key, 4)

    # Small shape consistent with the module: batch=2, seq=8 boxes, 4 coords.
    bboxes1 = jax.random.uniform(k1, (2, 8, 4), dtype=jnp.float32)
    bboxes2 = jax.random.uniform(k2, (2, 8, 4), dtype=jnp.float32)
    out = hybrid_l1_giou(bboxes1, bboxes2)
    out = jax.tree_util.tree_map(jax.block_until_ready, out)
    _check(out, _reference(bboxes1, bboxes2))

    # Second case exercising multi-block accumulation + boundary masking
    # (M=2500 boxes, small block_rows to force several grid steps).
    bb1 = jax.random.uniform(k3, (4, 625, 4), dtype=jnp.float32)
    bb2 = jax.random.uniform(k4, (4, 625, 4), dtype=jnp.float32)
    out2 = hybrid_l1_giou(bb1, bb2, block_rows=8)
    out2 = jax.tree_util.tree_map(jax.block_until_ready, out2)
    _check(out2, _reference(bb1, bb2))

    print("KERNEL_OK")
</pallas_src>

<mosaic_0001>
module attributes {stable_mosaic.version = 11 : i64} {
  func.func @_hybrid_kernel(%arg0: i32, %arg1: memref<8x128xf32, #tpu.memory_space<vmem>>, %arg2: memref<8x128xf32, #tpu.memory_space<vmem>>, %arg3: memref<1x128xf32, #tpu.memory_space<vmem>>, %arg4: memref<1x128xf32, #tpu.memory_space<vmem>>, %arg5: memref<8x128xf32, #tpu.memory_space<vmem>>, %arg6: memref<8x128xf32, #tpu.memory_space<vmem>>) attributes {dimension_semantics = [#tpu.dimension_semantics<arbitrary>], iteration_bounds = array<i64: 1>, scalar_prefetch = 0 : i64, scratch_operands = 2 : i64, tpu.core_type = #tpu.core_type<tc>, window_params = [{transform_indices = @transform_0, window_bounds = array<i64: 8, 128>}, {transform_indices = @transform_1, window_bounds = array<i64: 8, 128>}, {pipeline_mode = #tpu.pipeline_mode<synchronous>, transform_indices = @transform_2, window_bounds = array<i64: 1, 128>}, {pipeline_mode = #tpu.pipeline_mode<synchronous>, transform_indices = @transform_3, window_bounds = array<i64: 1, 128>}]} {
    %c0_i32 = arith.constant 0 : i32
    %0 = arith.cmpi eq, %arg0, %c0_i32 : i32
    %1 = arith.extui %0 : i1 to i32
    %c0_i32_0 = arith.constant 0 : i32
    %2 = arith.cmpi ne, %1, %c0_i32_0 : i32
    scf.if %2 {
      %cst_22 = arith.constant 0.000000e+00 : f32
      %87 = vector.broadcast %cst_22 : f32 to vector<8x128xf32>
      %c0_23 = arith.constant 0 : index
      %c0_24 = arith.constant 0 : index
      %88 = vector.load %arg5[%c0_23, %c0_24] : memref<8x128xf32, #tpu.memory_space<vmem>>, vector<8x128xf32>
      tpu.vector_store %arg5[%c0_23, %c0_24], %87 {strides = array<i32>} : memref<8x128xf32, #tpu.memory_space<vmem>>, vector<8x128xf32>,
      %cst_25 = arith.constant 0.000000e+00 : f32
      %89 = vector.broadcast %cst_25 : f32 to vector<8x128xf32>
      %c0_26 = arith.constant 0 : index
      %c0_27 = arith.constant 0 : index
      %90 = vector.load %arg6[%c0_26, %c0_27] : memref<8x128xf32, #tpu.memory_space<vmem>>, vector<8x128xf32>
      tpu.vector_store %arg6[%c0_26, %c0_27], %89 {strides = array<i32>} : memref<8x128xf32, #tpu.memory_space<vmem>>, vector<8x128xf32>,
    } else {
    }
    %c0 = arith.constant 0 : index
    %c0_1 = arith.constant 0 : index
    %3 = vector.load %arg1[%c0, %c0_1] : memref<8x128xf32, #tpu.memory_space<vmem>>, vector<8x128xf32>
    %c0_2 = arith.constant 0 : index
    %c0_3 = arith.constant 0 : index
    %4 = vector.load %arg2[%c0_2, %c0_3] : memref<8x128xf32, #tpu.memory_space<vmem>>, vector<8x128xf32>
    %5 = arith.subf %3, %4 : vector<8x128xf32>
    %6 = math.absf %5 : vector<8x128xf32>
    %c127_i32 = arith.constant 127 : i32
    %7 = tpu.dynamic_rotate %3 by %c127_i32 dim 1 : vector<8x128xf32>, i32 -> vector<8x128xf32>
    %c126_i32 = arith.constant 126 : i32
    %8 = tpu.dynamic_rotate %3 by %c126_i32 dim 1 : vector<8x128xf32>, i32 -> vector<8x128xf32>
    %c125_i32 = arith.constant 125 : i32
    %9 = tpu.dynamic_rotate %3 by %c125_i32 dim 1 : vector<8x128xf32>, i32 -> vector<8x128xf32>
    %c127_i32_4 = arith.constant 127 : i32
    %10 = tpu.dynamic_rotate %4 by %c127_i32_4 dim 1 : vector<8x128xf32>, i32 -> vector<8x128xf32>
    %c126_i32_5 = arith.constant 126 : i32
    %11 = tpu.dynamic_rotate %4 by %c126_i32_5 dim 1 : vector<8x128xf32>, i32 -> vector<8x128xf32>
    %c125_i32_6 = arith.constant 125 : i32
    %12 = tpu.dynamic_rotate %4 by %c125_i32_6 dim 1 : vector<8x128xf32>, i32 -> vector<8x128xf32>
    %cst = arith.constant 9.99999971E-10 : f32
    %13 = vector.broadcast %cst : f32 to vector<8x128xf32>
    %14 = arith.maximumf %8, %13 : vector<8x128xf32>
    %15 = arith.addf %3, %14 : vector<8x128xf32>
    %cst_7 = arith.constant 9.99999971E-10 : f32
    %16 = vector.broadcast %cst_7 : f32 to vector<8x128xf32>
    %17 = arith.maximumf %9, %16 : vector<8x128xf32>
    %18 = arith.addf %7, %17 : vector<8x128xf32>
    %cst_8 = arith.constant 9.99999971E-10 : f32
    %19 = vector.broadcast %cst_8 : f32 to vector<8x128xf32>
    %20 = arith.maximumf %11, %19 : vector<8x128xf32>
    %21 = arith.addf %4, %20 : vector<8x128xf32>
    %cst_9 = arith.constant 9.99999971E-10 : f32
    %22 = vector.broadcast %cst_9 : f32 to vector<8x128xf32>
    %23 = arith.maximumf %12, %22 : vector<8x128xf32>
    %24 = arith.addf %10, %23 : vector<8x128xf32>
    %25 = arith.maximumf %3, %4 : vector<8x128xf32>
    %26 = arith.maximumf %7, %10 : vector<8x128xf32>
    %27 = arith.minimumf %15, %21 : vector<8x128xf32>
    %28 = arith.minimumf %18, %24 : vector<8x128xf32>
    %29 = arith.cmpf ogt, %27, %25 : vector<8x128xf32>
    %30 = arith.cmpf ogt, %28, %26 : vector<8x128xf32>
    %31 = arith.andi %29, %30 : vector<8x128xi1>
    %32 = arith.subf %27, %25 : vector<8x128xf32>
    %33 = arith.subf %28, %26 : vector<8x128xf32>
    %34 = arith.mulf %32, %33 : vector<8x128xf32>
    %cst_10 = arith.constant 0.000000e+00 : f32
    %35 = vector.broadcast %cst_10 : f32 to vector<8x128xf32>
    %36 = arith.select %31, %34, %35 : vector<8x128xi1>, vector<8x128xf32>
    %37 = arith.subf %15, %3 : vector<8x128xf32>
    %38 = arith.subf %18, %7 : vector<8x128xf32>
    %39 = arith.mulf %37, %38 : vector<8x128xf32>
    %40 = arith.subf %21, %4 : vector<8x128xf32>
    %41 = arith.subf %24, %10 : vector<8x128xf32>
    %42 = arith.mulf %40, %41 : vector<8x128xf32>
    %43 = arith.addf %39, %42 : vector<8x128xf32>
    %44 = arith.subf %43, %36 : vector<8x128xf32>
    %cst_11 = arith.constant 9.99999971E-10 : f32
    %45 = vector.broadcast %cst_11 : f32 to vector<8x128xf32>
    %46 = arith.addf %44, %45 : vector<8x128xf32>
    %47 = tpu.reciprocal %46 {approx = true} : vector<8x128xf32> -> vector<8x128xf32>
    %48 = arith.mulf %46, %47 : vector<8x128xf32>
    %cst_12 = arith.constant 2.000000e+00 : f32
    %49 = vector.broadcast %cst_12 : f32 to vector<8x128xf32>
    %50 = arith.subf %49, %48 : vector<8x128xf32>
    %51 = arith.mulf %47, %50 : vector<8x128xf32>
    %52 = arith.mulf %36, %51 : vector<8x128xf32>
    %53 = arith.minimumf %3, %4 : vector<8x128xf32>
    %54 = arith.minimumf %7, %10 : vector<8x128xf32>
    %55 = arith.maximumf %15, %21 : vector<8x128xf32>
    %56 = arith.maximumf %18, %24 : vector<8x128xf32>
    %57 = arith.subf %55, %53 : vector<8x128xf32>
    %58 = arith.subf %56, %54 : vector<8x128xf32>
    %59 = arith.mulf %57, %58 : vector<8x128xf32>
    %60 = arith.subf %59, %44 : vector<8x128xf32>
    %cst_13 = arith.constant 9.99999971E-10 : f32
    %61 = vector.broadcast %cst_13 : f32 to vector<8x128xf32>
    %62 = arith.addf %59, %61 : vector<8x128xf32>
    %63 = tpu.reciprocal %62 {approx = true} : vector<8x128xf32> -> vector<8x128xf32>
    %64 = arith.mulf %62, %63 : vector<8x128xf32>
    %cst_14 = arith.constant 2.000000e+00 : f32
    %65 = vector.broadcast %cst_14 : f32 to vector<8x128xf32>
    %66 = arith.subf %65, %64 : vector<8x128xf32>
    %67 = arith.mulf %63, %66 : vector<8x128xf32>
    %68 = arith.mulf %60, %67 : vector<8x128xf32>
    %69 = arith.subf %52, %68 : vector<8x128xf32>
    %cst_15 = arith.constant 1.000000e+00 : f32
    %70 = vector.broadcast %cst_15 : f32 to vector<8x128xf32>
    %71 = arith.subf %70, %69 : vector<8x128xf32>
    %cst_16 = arith.constant -1.000000e+00 : f32
    %cst_17 = arith.constant 1.000000e+01 : f32
    %72 = vector.broadcast %cst_16 : f32 to vector<8x128xf32>
    %73 = arith.maximumf %72, %71 : vector<8x128xf32>
    %74 = vector.broadcast %cst_17 : f32 to vector<8x128xf32>
    %75 = arith.minimumf %74, %73 : vector<8x128xf32>
    %c1_i32 = arith.constant 1 : i32
    %76 = arith.addi %arg0, %c1_i32 : i32
    %c1024_i32 = arith.constant 1024 : i32
    %77 = arith.muli %76, %c1024_i32 : i32
    %c64_i32 = arith.constant 64 : i32
    %78 = arith.cmpi sle, %77, %c64_i32 : i32
    %79 = arith.extui %78 : i1 to i32
    %c0_i32_18 = arith.constant 0 : i32
    %80 = arith.cmpi ne, %79, %c0_i32_18 : i32
    scf.if %80 {
      %c0_22 = arith.constant 0 : index
      %c0_23 = arith.constant 0 : index
      %87 = vector.load %arg5[%c0_22, %c0_23] : memref<8x128xf32, #tpu.memory_space<vmem>>, vector<8x128xf32>
      %88 = arith.addf %87, %6 : vector<8x128xf32>
      %c0_24 = arith.constant 0 : index
      %c0_25 = arith.constant 0 : index
      %89 = vector.load %arg5[%c0_24, %c0_25] : memref<8x128xf32, #tpu.memory_space<vmem>>, vector<8x128xf32>
      tpu.vector_store %arg5[%c0_24, %c0_25], %88 {strides = array<i32>} : memref<8x128xf32, #tpu.memory_space<vmem>>, vector<8x128xf32>,
      %c0_26 = arith.constant 0 : index
      %c0_27 = arith.constant 0 : index
      %90 = vector.load %arg6[%c0_26, %c0_27] : memref<8x128xf32, #tpu.memory_space<vmem>>, vector<8x128xf32>
      %91 = arith.addf %90, %75 : vector<8x128xf32>
      %c0_28 = arith.constant 0 : index
      %c0_29 = arith.constant 0 : index
      %92 = vector.load %arg6[%c0_28, %c0_29] : memref<8x128xf32, #tpu.memory_space<vmem>>, vector<8x128xf32>
      tpu.vector_store %arg6[%c0_28, %c0_29], %91 {strides = array<i32>} : memref<8x128xf32, #tpu.memory_space<vmem>>, vector<8x128xf32>,
    } else {
    }
    %true = arith.constant true
    %81 = arith.xori %78, %true : i1
    %82 = arith.extui %81 : i1 to i32
    %c0_i32_19 = arith.constant 0 : i32
    %83 = arith.cmpi ne, %82, %c0_i32_19 : i32
    scf.if %83 {
      %87 = tpu.iota {dimensions = array<i32: 0>} : vector<8x128xi32>
      %88 = tpu.iota {dimensions = array<i32: 1>} : vector<8x128xi32>
      %c1024_i32_22 = arith.constant 1024 : i32
      %89 = arith.muli %arg0, %c1024_i32_22 : i32
      %c128_i32 = arith.constant 128 : i32
      %90 = vector.broadcast %c128_i32 : i32 to vector<8x128xi32>
      %91 = arith.muli %87, %90 : vector<8x128xi32>
      %92 = vector.broadcast %89 : i32 to vector<8x128xi32>
      %93 = arith.addi %92, %91 : vector<8x128xi32>
      %94 = arith.addi %93, %88 : vector<8x128xi32>
      %c64_i32_23 = arith.constant 64 : i32
      %95 = vector.broadcast %c64_i32_23 : i32 to vector<8x128xi32>
      %96 = arith.cmpi slt, %94, %95 : vector<8x128xi32>
      %c0_24 = arith.constant 0 : index
      %c0_25 = arith.constant 0 : index
      %97 = vector.load %arg5[%c0_24, %c0_25] : memref<8x128xf32, #tpu.memory_space<vmem>>, vector<8x128xf32>
      %cst_26 = arith.constant 0.000000e+00 : f32
      %98 = vector.broadcast %cst_26 : f32 to vector<8x128xf32>
      %99 = arith.select %96, %6, %98 : vector<8x128xi1>, vector<8x128xf32>
      %100 = arith.addf %97, %99 : vector<8x128xf32>
      %c0_27 = arith.constant 0 : index
      %c0_28 = arith.constant 0 : index
      %101 = vector.load %arg5[%c0_27, %c0_28] : memref<8x128xf32, #tpu.memory_space<vmem>>, vector<8x128xf32>
      tpu.vector_store %arg5[%c0_27, %c0_28], %100 {strides = array<i32>} : memref<8x128xf32, #tpu.memory_space<vmem>>, vector<8x128xf32>,
      %c0_29 = arith.constant 0 : index
      %c0_30 = arith.constant 0 : index
      %102 = vector.load %arg6[%c0_29, %c0_30] : memref<8x128xf32, #tpu.memory_space<vmem>>, vector<8x128xf32>
      %cst_31 = arith.constant 0.000000e+00 : f32
      %103 = vector.broadcast %cst_31 : f32 to vector<8x128xf32>
      %104 = arith.select %96, %75, %103 : vector<8x128xi1>, vector<8x128xf32>
      %105 = arith.addf %102, %104 : vector<8x128xf32>
      %c0_32 = arith.constant 0 : index
      %c0_33 = arith.constant 0 : index
      %106 = vector.load %arg6[%c0_32, %c0_33] : memref<8x128xf32, #tpu.memory_space<vmem>>, vector<8x128xf32>
      tpu.vector_store %arg6[%c0_32, %c0_33], %105 {strides = array<i32>} : memref<8x128xf32, #tpu.memory_space<vmem>>, vector<8x128xf32>,
    } else {
    }
    %c0_i32_20 = arith.constant 0 : i32
    %84 = arith.cmpi eq, %arg0, %c0_i32_20 : i32
    %85 = arith.extui %84 : i1 to i32
    %c0_i32_21 = arith.constant 0 : i32
    %86 = arith.cmpi ne, %85, %c0_i32_21 : i32
    scf.if %86 {
      %c0_22 = arith.constant 0 : index
      %c0_23 = arith.constant 0 : index
      %87 = vector.load %arg5[%c0_22, %c0_23] : memref<8x128xf32, #tpu.memory_space<vmem>>, vector<8x128xf32>
      %cst_24 = arith.constant dense<0.000000e+00> : vector<128xf32>
      %88 = vector.multi_reduction <add>, %87, %cst_24 [0] : vector<8x128xf32> to vector<128xf32>
      %89 = vector.shape_cast %88 : vector<128xf32> to vector<1x128xf32>
      %c0_25 = arith.constant 0 : index
      %c0_26 = arith.constant 0 : index
      %90 = vector.load %arg3[%c0_25, %c0_26] : memref<1x128xf32, #tpu.memory_space<vmem>>, vector<1x128xf32>
      tpu.vector_store %arg3[%c0_25, %c0_26], %89 {strides = array<i32>} : memref<1x128xf32, #tpu.memory_space<vmem>>, vector<1x128xf32>,
      %c0_27 = arith.constant 0 : index
      %c0_28 = arith.constant 0 : index
      %91 = vector.load %arg6[%c0_27, %c0_28] : memref<8x128xf32, #tpu.memory_space<vmem>>, vector<8x128xf32>
      %cst_29 = arith.constant dense<0.000000e+00> : vector<128xf32>
      %92 = vector.multi_reduction <add>, %91, %cst_29 [0] : vector<8x128xf32> to vector<128xf32>
      %93 = vector.shape_cast %92 : vector<128xf32> to vector<1x128xf32>
      %c0_30 = arith.constant 0 : index
      %c0_31 = arith.constant 0 : index
      %94 = vector.load %arg4[%c0_30, %c0_31] : memref<1x128xf32, #tpu.memory_space<vmem>>, vector<1x128xf32>
      tpu.vector_store %arg4[%c0_30, %c0_31], %93 {strides = array<i32>} : memref<1x128xf32, #tpu.memory_space<vmem>>, vector<1x128xf32>,
    } else {
    }
    return
  }
  func.func @transform_0(%arg0: i32) -> (i32, i32) {
    %c0_i32 = arith.constant 0 : i32
    %c0_i32_0 = arith.constant 0 : i32
    return %arg0, %c0_i32 : i32, i32
  }
  func.func @transform_1(%arg0: i32) -> (i32, i32) {
    %c0_i32 = arith.constant 0 : i32
    %c0_i32_0 = arith.constant 0 : i32
    return %arg0, %c0_i32 : i32, i32
  }
  func.func @transform_2(%arg0: i32) -> (i32, i32) {
    %c0_i32 = arith.constant 0 : i32
    %c0_i32_0 = arith.constant 0 : i32
    %c0_i32_1 = arith.constant 0 : i32
    return %c0_i32, %c0_i32_0 : i32, i32
  }
  func.func @transform_3(%arg0: i32) -> (i32, i32) {
    %c0_i32 = arith.constant 0 : i32
    %c0_i32_0 = arith.constant 0 : i32
    %c0_i32_1 = arith.constant 0 : i32
    return %c0_i32, %c0_i32_0 : i32, i32
  }
}

</mosaic_0001>

<bundles_post_ra>
// kernel: tpu_custom_call.1
= control target key start
LH: loop header
LB: loop body
LE: loop exit
PB: predicated region body
PF: predicated region fallthrough
CT: control target
= control target key end

     0   :  { %9 = vsyncpa [#allocation5], 0  ;;  %s360_s0 = inlined_call_operand.hbm [shape: f32[8,128], index: 0, kind: input, shape index: {}]   ;;  %s361_s1 = inlined_call_operand.hbm [shape: f32[8,128], index: 1, kind: input, shape index: {}]   ;;  %s362_s2 = inlined_call_operand.hbm [shape: f32[1,128], index: 2, kind: output, shape index: {0}]   ;;  %s363_s3 = inlined_call_operand.hbm [shape: f32[1,128], index: 3, kind: output, shape index: {1}]  }
   0x1   :  { %10 = vsyncpa [#allocation8], 0 }
   0x2   :  { %11 = vsyncpa [#allocation6], 0 }
   0x3   :  { %12 = vsyncpa [#allocation11], 0  ;;  %s294_s12 = smov [#allocation4]   ;;  %s295_s14 = smov [#allocation7]  }
   0x4   :  { %s19_s13 = sshll.u32 %s294_s12, 4  ;;  %s29_s15 = sshll.u32 %s295_s14, 4  ;;  %s20_s13 = int_to_ptr.vmem [resolvable:$true] %s19_s13  ;;  %s30_s15 = int_to_ptr.vmem [resolvable:$true] %s29_s15 }
   0x5   :  { %s214_s16 = scalar_lea.vmem %s20_s13, 128  ;;  %p219_p1 = scmp.lt.s32.totalorder %s20_s13, %s20_s13 }
   0x6   :  { %p215_p0 = scmp.ne.s32.totalorder %s20_s13, %s214_s16  ;;  %p220_p2 = scmp.lt.s32.totalorder %s214_s16, %s214_s16 }
   0x8   :  { %p221_p3 = por %p220_p2, %p219_p1 }
   0xa   :  { %p222_p4 = pnand %p221_p3, %p215_p0 }
   0xc   :  { %225 = shalt.err (!%p222_p4)
}
   0xd   :  { %22 = dma.hbm_to_vmem [thread:$0]  %s360_s0, 128, %s20_s13, [#allocation5]  }
   0xe   :  { %s234_s19 = scalar_lea.vmem %s30_s15, 128  ;;  %p239_p6 = scmp.lt.s32.totalorder %s30_s15, %s30_s15 }
   0xf   :  { %p235_p5 = scmp.ne.s32.totalorder %s30_s15, %s234_s19  ;;  %p240_p7 = scmp.lt.s32.totalorder %s234_s19, %s234_s19 }
  0x11   :  { %p241_p8 = por %p240_p7, %p239_p6 }
  0x13   :  { %p242_p9 = pnand %p241_p8, %p235_p5 }
  0x15   :  { %245 = shalt.err (!%p242_p9)
}
  0x16   :  { %32 = dma.hbm_to_vmem [thread:$0]  %s361_s1, 128, %s30_s15, [#allocation8]  }
  0x17   :  { %286 = dma.done.wait [#allocation5], 128  }
  0x18   :  { %287 = vsyncadd [#allocation5], 4294967168 }
  0x19   :  { %288 = dma.done.wait [#allocation8], 128  }
  0x1a   :  { %289 = vsyncadd [#allocation8], 4294967168  ;;  %v327_v0 = vld [vmem:[#allocation7] sm:$0xff]  ;;  %v329_v1 = vld [vmem:[#allocation4] sm:$0xff]  ;;  %s296_s0 = smov 126   ;;  %s297_s22 = smov 125   ;;  %v128_v2 = vlaneseq }
  0x1b   :  { %57 = vrot.lane.b32.xlu1 %v327_v0, %s296_s0  ;;  %51 = vrot.lane.b32.xlu0 %v329_v1, %s296_s0  ;;  %s298_s23 = smov 127   ;;  %v47_v3 = vsub.f32 %v329_v1, %v327_v0  ;;  %s299_s1 = smov [#allocation9]  }
  0x1c   :  { %v129_v4 = vshrl.u32 %v128_v2, 7  ;;  %v131_v5 = vand.u32 127, %v128_v2  ;;  %s171_s24 = sshll.u32 %s299_s1, 4  ;;  %s172_s24 = int_to_ptr.vmem [resolvable:$true] %s171_s24 }
  0x1d   :  { %v48_v7 = vand.u32 2147483647, %v47_v3  ;;  %s246_s25 = scalar_lea.vmem %s172_s24, 16  ;;  %s250_s26 = scalar_lea.vmem %s172_s24, 32 }
  0x1e   :  { %v133_v6 = vmul.u32 128, %v129_v4  ;;  %p247_p10 = scmp.ne.s32.totalorder %s172_s24, %s246_s25  ;;  %p251_p11 = scmp.lt.s32.totalorder %s172_s24, %s172_s24 }
  0x1f   :  { %59 = vrot.lane.b32.xlu1 %v327_v0, %s297_s22  ;;  %53 = vrot.lane.b32.xlu0 %v329_v1, %s297_s22  ;;  %p252_p12 = scmp.lt.s32.totalorder %s250_s26, %s246_s25 }
  0x20   :  { %v339_v8 = vadd.s32 %v133_v6, %v131_v5 }
  0x21   :  { %p253_p13 = por %p252_p12, %p251_p11 }
  0x22   :  { %vm137_vm0 = vcmp.lt.s32.totalorder %v339_v8, 64 }
  0x23   :  { %55 = vrot.lane.b32.xlu1 %v327_v0, %s298_s23  ;;  %49 = vrot.lane.b32.xlu0 %v329_v1, %s298_s23  ;;  %v139_v9 = vsel %vm137_vm0, %v48_v7, 0.0  ;;  %p254_p0 = pnand %p253_p13, %p247_p10 }
  0x24   :  { %v150_v10 = vrot.slane %v139_v9, 4 }
  0x26   :  { %v151_v11 = vadd.f32 %v150_v10, %v139_v9 }
  0x28   :  { %v152_v12 = vrot.slane %v151_v11, 2 }
  0x2a   :  { %v153_v13 = vadd.f32 %v152_v12, %v151_v11 }
  0x2c   :  { %v154_v14 = vrot.slane %v153_v13, 1 }
  0x2e   :  { %v155_v15 = vadd.f32 %v154_v14, %v153_v13 }
  0x30   :  { %156 = vst [vmem:[#allocation9] sm:$0x1] %v155_v15 }
  0x31   :  { %257 = shalt.err (!%p254_p0)
}
  0x32   :  { %174 = dma.vmem_to_hbm [thread:$0]  %s172_s24, 16, %s362_s2, [#allocation6]   ;;  %v69_v26 = vmax.f32 %v329_v1, %v327_v0  ;;  %v94_v30 = vmin.f32 %v329_v1, %v327_v0 }
  0x33   :  { %s300_s2 = smov [#allocation10]  }
  0x34   :  { %s181_s29 = sshll.u32 %s300_s2, 4  ;;  %s182_s29 = int_to_ptr.vmem [resolvable:$true] %s181_s29 }
  0x35   :  { %s266_s30 = scalar_lea.vmem %s182_s29, 16  ;;  %s270_s4 = scalar_lea.vmem %s182_s29, 32 }
  0x36   :  { %p267_p1 = scmp.ne.s32.totalorder %s182_s29, %s266_s30  ;;  %p271_p2 = scmp.lt.s32.totalorder %s182_s29, %s182_s29 }
  0x37   :  { %p272_p3 = scmp.lt.s32.totalorder %s270_s4, %s266_s30 }
  0x39   :  { %p273_p4 = por %p272_p3, %p271_p2 }
  0x3b   :  { %p274_p5 = pnand %p273_p4, %p267_p1 }
  0x8d   :  { %v58_v16 = vpop.permute.xlu1 %57  ;;  %v52_v17 = vpop.permute.xlu0 %51 }
  0x8e   :  { %v65_v18 = vmax.f32 %v58_v16, 1e-09  ;;  %v61_v19 = vmax.f32 %v52_v17, 1e-09 }
  0x90   :  { %v66_v20 = vadd.f32 %v65_v18, %v327_v0  ;;  %v62_v21 = vadd.f32 %v61_v19, %v329_v1 }
  0x91   :  { %v60_v22 = vpop.permute.xlu1 %59  ;;  %v54_v23 = vpop.permute.xlu0 %53 }
  0x92   :  { %v67_v24 = vmax.f32 %v60_v22, 1e-09  ;;  %v63_v25 = vmax.f32 %v54_v23, 1e-09  ;;  %v71_v27 = vmin.f32 %v62_v21, %v66_v20  ;;  %v83_v33 = vsub.f32 %v66_v20, %v327_v0 }
  0x93   :  { %v80_v34 = vsub.f32 %v62_v21, %v329_v1  ;;  %v96_v35 = vmax.f32 %v62_v21, %v66_v20 }
  0x94   :  { %v76_v41 = vsub.f32 %v71_v27, %v69_v26  ;;  %vm73_vm2 = vcmp.gt.f32.partialorder %v71_v27, %v69_v26 }
  0x95   :  { %v56_v28 = vpop.permute.xlu1 %55  ;;  %v50_v29 = vpop.permute.xlu0 %49  ;;  %v98_v46 = vsub.f32 %v96_v35, %v94_v30 }
  0x96   :  { %v68_v31 = vadd.f32 %v67_v24, %v56_v28  ;;  %v64_v32 = vadd.f32 %v63_v25, %v50_v29  ;;  %v70_v36 = vmax.f32 %v50_v29, %v56_v28  ;;  %v95_v42 = vmin.f32 %v50_v29, %v56_v28 }
  0x98   :  { %v84_v37 = vsub.f32 %v68_v31, %v56_v28  ;;  %v72_v38 = vmin.f32 %v64_v32, %v68_v31  ;;  %v81_v39 = vsub.f32 %v64_v32, %v50_v29  ;;  %v97_v40 = vmax.f32 %v64_v32, %v68_v31 }
  0x9a   :  { %v85_v43 = vmul.f32 %v84_v37, %v83_v33  ;;  %vm74_vm1 = vcmp.gt.f32.partialorder %v72_v38, %v70_v36  ;;  %v77_v44 = vsub.f32 %v72_v38, %v70_v36  ;;  %v82_v45 = vmul.f32 %v81_v39, %v80_v34 }
  0x9b   :  { %v99_v47 = vsub.f32 %v97_v40, %v95_v42  ;;  %vm75_vm3 = vmand %vm73_vm2, %vm74_vm1 }
  0x9c   :  { %v78_v48 = vmul.f32 %v77_v44, %v76_v41  ;;  %v86_v49 = vadd.f32 %v85_v43, %v82_v45 }
  0x9d   :  { %v100_v50 = vmul.f32 %v99_v47, %v98_v46 }
  0x9e   :  { %v79_v51 = vsel %vm75_vm3, %v78_v48, 0.0 }
  0x9f   :  { %v87_v52 = vsub.f32 %v86_v49, %v79_v51  ;;  %v102_v53 = vadd.f32 1e-09, %v100_v50 }
  0xa1   :  { %v88_v54 = vadd.f32 1e-09, %v87_v52  ;;  %202 = vrcp.f32 %v102_v53  ;;  %v101_v63 = vsub.f32 %v100_v50, %v87_v52 }
  0xa3   :  { %204 = vrcp.f32 %v88_v54 }
  0xae   :  { %v203_v55 = vpop.eup %202 }
  0xaf   :  { %v104_v56 = vmul.f32 %v203_v55, %v102_v53 }
  0xb0   :  { %v205_v57 = vpop.eup %204 }
  0xb1   :  { %v90_v58 = vmul.f32 %v205_v57, %v88_v54  ;;  %v105_v59 = vsub.f32 2.0, %v104_v56 }
  0xb3   :  { %v91_v60 = vsub.f32 2.0, %v90_v58  ;;  %v106_v61 = vmul.f32 %v203_v55, %v105_v59 }
  0xb5   :  { %v92_v62 = vmul.f32 %v205_v57, %v91_v60  ;;  %v107_v1 = vmul.f32 %v106_v61, %v101_v63 }
  0xb7   :  { %v93_v0 = vmul.f32 %v92_v62, %v79_v51 }
  0xb9   :  { %v108_v2 = vsub.f32 %v93_v0, %v107_v1 }
  0xbb   :  { %v109_v3 = vsub.f32 1.0, %v108_v2 }
  0xbd   :  { %v110_v4 = vmax.f32 %v109_v3, -1.0 }
  0xbf   :  { %v111_v5 = vmin.f32 %v110_v4, 10.0 }
  0xc1   :  { %v143_v6 = vsel %vm137_vm0, %v111_v5, 0.0 }
  0xc2   :  { %v158_v7 = vrot.slane %v143_v6, 4 }
  0xc4   :  { %v159_v9 = vadd.f32 %v158_v7, %v143_v6 }
  0xc6   :  { %v160_v10 = vrot.slane %v159_v9, 2 }
  0xc8   :  { %v161_v11 = vadd.f32 %v160_v10, %v159_v9 }
  0xca   :  { %v162_v12 = vrot.slane %v161_v11, 1 }
  0xcc   :  { %v163_v13 = vadd.f32 %v162_v12, %v161_v11 }
  0xce   :  { %164 = vst [vmem:[#allocation10] sm:$0x1] %v163_v13 }
  0xcf   :  { %277 = shalt.err (!%p274_p5)
}
  0xd0   :  { %184 = dma.vmem_to_hbm [thread:$0]  %s182_s29, 16, %s363_s3, [#allocation11]  }
  0xd1   :  { %290 = dma.done.wait [#allocation6], 16  }
  0xd2   :  { %291 = vsyncadd [#allocation6], 4294967280 }
  0xd3   :  { %292 = dma.done.wait [#allocation11], 16  }
  0xd4   :  { %293 = vsyncadd [#allocation11], 4294967280 }
  0xd5   :  { %191 = vsyncpa [#allocation5], 1 }
  0xd6   :  { %192 = vsyncpa [#allocation8], 1 }
  0xd7   :  { %193 = vsyncpa [#allocation6], 1 }
  0xd8   :  { %194 = vsyncpa [#allocation11], 1 }

</bundles_post_ra>
